<compile_context>
chip_gen: v7x
topology: tpu7x:2x2x1
jax: 0.10.0
libtpu: 0.0.40
codegen_flags: <defaults>
</compile_context>

<pallas_src>
import functools
import math

import jax
import jax.numpy as jnp
from jax import lax
from jax.experimental import pallas as pl
from jax.experimental.pallas import tpu as pltpu


# ---------------------------------------------------------------------------
# Kernels
# ---------------------------------------------------------------------------

def _linear_kernel(activation, x_ref, w_ref, b_ref, o_ref):
    """o = act(x @ w + b) for one row tile.  w is (K, N), b is (1, N)."""
    y = jnp.dot(x_ref[...], w_ref[...], preferred_element_type=jnp.float32)
    y = y + b_ref[...]
    if activation == "relu":
        y = jnp.maximum(y, 0.0)
    elif activation == "sigmoid":
        y = jax.nn.sigmoid(y)
    o_ref[...] = y.astype(o_ref.dtype)


def _add_linear_kernel(x_ref, pe_ref, w_ref, b_ref, o_ref):
    """o = (x + pe) @ w + b  (positional-encoding add fused into projection)."""
    y = jnp.dot(x_ref[...] + pe_ref[...], w_ref[...],
                preferred_element_type=jnp.float32)
    o_ref[...] = (y + b_ref[...]).astype(o_ref.dtype)


def _layernorm_f32(z, g, b, eps):
    mu = jnp.mean(z, axis=-1, keepdims=True)
    zc = z - mu
    var = jnp.mean(zc * zc, axis=-1, keepdims=True)
    inv = lax.rsqrt(var + eps)
    return zc * inv * g + b


def _linear_res_layernorm_kernel(eps, x_ref, res_ref, w_ref, b_ref,
                                 g_ref, be_ref, o_ref):
    """o = LayerNorm(res + (x @ w + b)).  Fused attn-out-proj + add + LN."""
    y = jnp.dot(x_ref[...], w_ref[...], preferred_element_type=jnp.float32)
    y = y + b_ref[...]
    z = res_ref[...].astype(jnp.float32) + y
    o_ref[...] = _layernorm_f32(z, g_ref[...], be_ref[...], eps).astype(o_ref.dtype)


def _ffn_res_layernorm_kernel(eps, x_ref, w1_ref, b1_ref, w2_ref, b2_ref,
                              g_ref, be_ref, o_ref):
    """o = LayerNorm(x + relu(x @ w1 + b1) @ w2 + b2).  Fused FFN block."""
    x = x_ref[...]
    h = jnp.dot(x, w1_ref[...], preferred_element_type=jnp.float32)
    h = jnp.maximum(h + b1_ref[...], 0.0)
    y = jnp.dot(h, w2_ref[...].astype(jnp.float32),
                preferred_element_type=jnp.float32)
    z = x.astype(jnp.float32) + y + b2_ref[...]
    o_ref[...] = _layernorm_f32(z, g_ref[...], be_ref[...], eps).astype(o_ref.dtype)


def _mha_kernel(scale, q_ref, k_ref, v_ref, bias_ref, o_ref):
    """One (batch, head): softmax(q k^T * scale + key_bias) @ v."""
    q = q_ref[...].astype(jnp.float32)            # (S, hd)
    k = k_ref[...].astype(jnp.float32)            # (S, hd)
    v = v_ref[...].astype(jnp.float32)            # (S, hd)
    s = lax.dot_general(q, k, (((1,), (1,)), ((), ())),
                        preferred_element_type=jnp.float32) * scale
    s = s + bias_ref[...]                         # (1, S) key-padding bias
    m = jnp.max(s, axis=-1, keepdims=True)
    p = jnp.exp(s - m)
    l = jnp.sum(p, axis=-1, keepdims=True)
    o = jnp.dot(p, v, preferred_element_type=jnp.float32) / l
    o_ref[...] = o.astype(o_ref.dtype)


# ---------------------------------------------------------------------------
# Wrappers (layout plumbing + pallas_call)
# ---------------------------------------------------------------------------

def _pick_row_tile(rows):
    # Biggest sublane-aligned tile <= rows (capped so double-buffered blocks
    # stay far below the default scoped VMEM even on v7x).
    for t in (512, 256, 128, 64, 32, 16, 8):
        if rows >= t:
            return t
    return 8


def _pad_rows(x, tile):
    pad = (-x.shape[0]) % tile
    if pad:
        x = jnp.pad(x, ((0, pad), (0, 0)))
    return x


def _row_grid_call(kernel, row_inputs, bcast_inputs, out_cols, out_dtype):
    """Launch `kernel` on a parallel grid over sublane-aligned row tiles.

    row_inputs:   list of (T, K_i) arrays, tiled along rows.
    bcast_inputs: list of 2-D arrays fetched whole every step (weights/biases).
    """
    T = row_inputs[0].shape[0]
    tile = _pick_row_tile(T)
    padded = [_pad_rows(x, tile) for x in row_inputs]
    Tp = padded[0].shape[0]

    in_specs = [pl.BlockSpec((tile, x.shape[1]), lambda i: (i, 0))
                for x in padded]
    in_specs += [pl.BlockSpec(w.shape, lambda i: (0, 0)) for w in bcast_inputs]

    out = pl.pallas_call(
        kernel,
        out_shape=jax.ShapeDtypeStruct((Tp, out_cols), out_dtype),
        grid_spec=pltpu.PrefetchScalarGridSpec(
            num_scalar_prefetch=0,
            grid=(Tp // tile,),
            in_specs=in_specs,
            out_specs=pl.BlockSpec((tile, out_cols), lambda i: (i, 0)),
        ),
        compiler_params=pltpu.CompilerParams(
            dimension_semantics=("parallel",)),
    )(*padded, *bcast_inputs)
    return out[:T]


def pallas_linear(x, w, b, activation="none"):
    """x: (T, K), w: (K, N), b: (N,) -> act(x @ w + b), (T, N)."""
    N = w.shape[1]
    return _row_grid_call(functools.partial(_linear_kernel, activation),
                          [x], [w, b.reshape(1, N)], N, x.dtype)


def pallas_add_linear(x, pe, w, b):
    """(x + pe) @ w + b with the same row tiling as pallas_linear."""
    N = w.shape[1]
    return _row_grid_call(_add_linear_kernel,
                          [x, pe], [w, b.reshape(1, N)], N, x.dtype)


def pallas_linear_res_layernorm(x, res, w, b, gamma, beta, eps=1e-5):
    """LayerNorm(res + x @ w + b); x: (T, K), res: (T, N)."""
    N = w.shape[1]
    return _row_grid_call(
        functools.partial(_linear_res_layernorm_kernel, eps),
        [x, res],
        [w, b.reshape(1, N), gamma.reshape(1, N), beta.reshape(1, N)],
        N, res.dtype)


def pallas_ffn_res_layernorm(x, w1, b1, w2, b2, gamma, beta, eps=1e-5):
    """LayerNorm(x + relu(x @ w1 + b1) @ w2 + b2); x: (T, D)."""
    F = w1.shape[1]
    D = w2.shape[1]
    return _row_grid_call(
        functools.partial(_ffn_res_layernorm_kernel, eps),
        [x],
        [w1, b1.reshape(1, F), w2, b2.reshape(1, D),
         gamma.reshape(1, D), beta.reshape(1, D)],
        D, x.dtype)


def pallas_mha(q, k, v, bias, scale):
    """q, k, v: (B, H, S, hd); bias: (B, 1, S) additive key mask -> (B, H, S, hd)."""
    B, H, S, hd = q.shape
    qkv_spec = pl.BlockSpec((None, None, S, hd), lambda b, h: (b, h, 0, 0))
    return pl.pallas_call(
        functools.partial(_mha_kernel, scale),
        out_shape=jax.ShapeDtypeStruct((B, H, S, hd), q.dtype),
        grid_spec=pltpu.PrefetchScalarGridSpec(
            num_scalar_prefetch=0,
            grid=(B, H),
            in_specs=[
                qkv_spec, qkv_spec, qkv_spec,
                pl.BlockSpec((None, 1, S), lambda b, h: (b, 0, 0)),
            ],
            out_specs=pl.BlockSpec((None, None, S, hd),
                                   lambda b, h: (b, h, 0, 0)),
        ),
        compiler_params=pltpu.CompilerParams(
            dimension_semantics=("parallel", "parallel")),
    )(q, k, v, bias)


# ---------------------------------------------------------------------------
# Model forward (orchestration of the Pallas kernels)
# ---------------------------------------------------------------------------

def build_image_pos_encoding(n_regions, pos_w, pos_b):
    """pe = Linear(2, C)(coord grid).  Trace-time constant -> plain JAX."""
    d = n_regions
    coords = jnp.linspace(-1.0, 1.0, d)
    cx = jnp.tile(coords[None, :], (d, 1))
    cy = jnp.tile(coords[:, None], (1, d))
    ct = jnp.stack((cx, cy), axis=2).reshape(d * d, 2)        # (d*d, 2)
    return ct @ pos_w.T + pos_b                               # (d*d, C)


def transformer_encoder_layer(x2d, S, B, mask_bias, lp, nhead):
    """Post-norm nn.TransformerEncoderLayer (eval mode) on row-flattened x."""
    D = x2d.shape[1]
    hd = D // nhead
    # --- self-attention block ---
    qkv = pallas_linear(x2d, lp["in_proj_w"].T, lp["in_proj_b"])      # (T, 3D)
    qkv = qkv.reshape(S, B, 3, nhead, hd).transpose(2, 1, 3, 0, 4)    # (3,B,H,S,hd)
    attn = pallas_mha(qkv[0], qkv[1], qkv[2], mask_bias,
                      1.0 / math.sqrt(hd))                            # (B,H,S,hd)
    attn2d = attn.transpose(2, 0, 1, 3).reshape(S * B, D)
    # TODO(synk): dropout (p=0.1) is a no-op in eval mode; not implemented.
    # fused: out_proj + residual add + LayerNorm
    x2d = pallas_linear_res_layernorm(attn2d, x2d,
                                      lp["out_proj_w"].T, lp["out_proj_b"],
                                      lp["ln1_g"], lp["ln1_b"])
    # --- feed-forward block (fused: linear-relu-linear + add + LayerNorm) ---
    x2d = pallas_ffn_res_layernorm(x2d,
                                   lp["ff1_w"].T, lp["ff1_b"],
                                   lp["ff2_w"].T, lp["ff2_b"],
                                   lp["ln2_g"], lp["ln2_b"])
    return x2d


def joint_transformer_encoder_forward(text, text_len, image, params,
                                      grid_n, nhead):
    B = text.shape[0]

    # text: (B, S_text, Wd) -> seq-first -> row-flattened (S_text*B, Wd)
    text_sbd = jnp.transpose(text, (1, 0, 2))
    S_text = text_sbd.shape[0]
    text2d = text_sbd.reshape(S_text * B, -1)
    text_emb = pallas_linear(text2d, params["map_text_w"].T,
                             params["map_text_b"])

    # image: (B, C, Hc, Wc) -> (S_img, B, C) -> rows (S_img*B, C)
    C = image.shape[1]
    img_sbd = image.reshape(B, C, -1).transpose(2, 0, 1)
    S_img = img_sbd.shape[0]
    img2d = img_sbd.reshape(S_img * B, C)
    # Positional encoding computed in the wrapper; add fused into map_image.
    pe = build_image_pos_encoding(grid_n, params["pos_w"], params["pos_b"])
    pe_rows = jnp.repeat(pe, B, axis=0).astype(img2d.dtype)   # row = s*B + b
    img_emb = pallas_add_linear(img2d, pe_rows,
                                params["map_image_w"].T,
                                params["map_image_b"])

    # joint sequence [image ; text]; rows stay (seq-major, batch-minor)
    emb2d = jnp.concatenate([img_emb, text_emb], axis=0)
    S_tot = S_img + S_text

    # key-padding mask -> additive bias (B, 1, S_tot); image always valid
    pos = jnp.arange(S_tot)
    tl = jnp.asarray(text_len, dtype=jnp.int32)
    valid = (pos[None, :] < S_img) | (pos[None, :] < S_img + tl[:, None])
    mask_bias = jnp.where(valid, 0.0, -1e9).astype(jnp.float32)
    mask_bias = mask_bias.reshape(B, 1, S_tot)

    for lp in params["layers"]:
        emb2d = transformer_encoder_layer(emb2d, S_tot, B, mask_bias, lp, nhead)

    first = emb2d[:B]                              # sequence position 0, all batches
    probs = pallas_linear(first, params["head_w"].T, params["head_b"],
                          activation="sigmoid")
    return probs


# ---------------------------------------------------------------------------
# Pure-JAX reference (same math, no Pallas) for a correctness check
# ---------------------------------------------------------------------------

def reference_forward(text, text_len, image, params, grid_n, nhead, eps=1e-5):
    B = text.shape[0]
    text_sbd = jnp.transpose(text, (1, 0, 2))
    text_emb = text_sbd @ params["map_text_w"].T + params["map_text_b"]
    C = image.shape[1]
    img_sbd = image.reshape(B, C, -1).transpose(2, 0, 1)
    S_img = img_sbd.shape[0]
    pe = build_image_pos_encoding(grid_n, params["pos_w"], params["pos_b"])
    img = img_sbd + pe[:, None, :]
    img_emb = img @ params["map_image_w"].T + params["map_image_b"]
    x = jnp.concatenate([img_emb, text_emb], axis=0)
    S, _, D = x.shape
    hd = D // nhead
    pos = jnp.arange(S)
    tl = jnp.asarray(text_len, dtype=jnp.int32)
    valid = (pos[None, :] < S_img) | (pos[None, :] < S_img + tl[:, None])
    bias = jnp.where(valid, 0.0, -1e9)

    def ln(z, g, b):
        mu = jnp.mean(z, axis=-1, keepdims=True)
        zc = z - mu
        var = jnp.mean(zc * zc, axis=-1, keepdims=True)
        return zc * lax.rsqrt(var + eps) * g + b

    for lp in params["layers"]:
        qkv = x @ lp["in_proj_w"].T + lp["in_proj_b"]
        qkv = qkv.reshape(S, B, 3, nhead, hd).transpose(2, 1, 3, 0, 4)
        q, k, v = qkv[0], qkv[1], qkv[2]
        s = jnp.einsum("bhqd,bhkd->bhqk", q, k) / math.sqrt(hd)
        s = s + bias[:, None, None, :]
        p = jax.nn.softmax(s, axis=-1)
        o = jnp.einsum("bhqk,bhkd->bhqd", p, v)
        o = o.transpose(2, 0, 1, 3).reshape(S, B, D)
        o = o @ lp["out_proj_w"].T + lp["out_proj_b"]
        x = ln(x + o, lp["ln1_g"], lp["ln1_b"])
        h = jnp.maximum(x @ lp["ff1_w"].T + lp["ff1_b"], 0.0)
        h = h @ lp["ff2_w"].T + lp["ff2_b"]
        x = ln(x + h, lp["ln2_g"], lp["ln2_b"])
    logits = x[0] @ params["head_w"].T + params["head_b"]
    return jax.nn.sigmoid(logits)


# ---------------------------------------------------------------------------

if __name__ == "__main__":
    key = jax.random.PRNGKey(0)

    # small config consistent with the module
    embed_dim = 32
    feedforward_dim = 64
    num_layers = 2
    nhead = 4
    feat_dim = 32          # visual_features_dim
    grid_n = 4             # image grid (4, 4) -> 16 regions
    word_dim = 48
    num_labels = 5
    B = 2
    S_text = 8
    text_len = [8, 5]

    keys = iter(jax.random.split(key, 64))

    def nrm(shape, scale=0.1):
        return jax.random.normal(next(keys), shape, dtype=jnp.float32) * scale

    params = {
        "map_text_w": nrm((embed_dim, word_dim)),
        "map_text_b": nrm((embed_dim,)),
        "map_image_w": nrm((embed_dim, feat_dim)),
        "map_image_b": nrm((embed_dim,)),
        "pos_w": nrm((feat_dim, 2)),
        "pos_b": nrm((feat_dim,)),
        "head_w": nrm((num_labels, embed_dim)),
        "head_b": nrm((num_labels,)),
        "layers": [],
    }
    for _ in range(num_layers):
        params["layers"].append({
            "in_proj_w": nrm((3 * embed_dim, embed_dim)),
            "in_proj_b": nrm((3 * embed_dim,)),
            "out_proj_w": nrm((embed_dim, embed_dim)),
            "out_proj_b": nrm((embed_dim,)),
            "ff1_w": nrm((feedforward_dim, embed_dim)),
            "ff1_b": nrm((feedforward_dim,)),
            "ff2_w": nrm((embed_dim, feedforward_dim)),
            "ff2_b": nrm((embed_dim,)),
            "ln1_g": jnp.ones((embed_dim,), jnp.float32),
            "ln1_b": jnp.zeros((embed_dim,), jnp.float32),
            "ln2_g": jnp.ones((embed_dim,), jnp.float32),
            "ln2_b": jnp.zeros((embed_dim,), jnp.float32),
        })

    text = jax.random.normal(next(keys), (B, S_text, word_dim),
                             dtype=jnp.float32)
    image = jax.random.normal(next(keys), (B, feat_dim, grid_n, grid_n),
                              dtype=jnp.float32)

    probs = joint_transformer_encoder_forward(text, text_len, image, params,
                                              grid_n, nhead)
    probs = jax.block_until_ready(probs)

    ref = reference_forward(text, text_len, image, params, grid_n, nhead)
    ref = jax.block_until_ready(ref)

    assert probs.shape == (B, num_labels)
    assert bool(jnp.all(jnp.isfinite(probs)))
    assert jnp.allclose(probs, ref, atol=2e-3, rtol=2e-3), (probs, ref)

    print("KERNEL_OK")
</pallas_src>

<mosaic_0001>
module attributes {stable_mosaic.version = 11 : i64} {
  func.func @_linear_kernel(%arg0: i32, %arg1: memref<16x48xf32, #tpu.memory_space<vmem>>, %arg2: memref<48x32xf32, #tpu.memory_space<vmem>>, %arg3: memref<1x32xf32, #tpu.memory_space<vmem>>, %arg4: memref<16x32xf32, #tpu.memory_space<vmem>>) attributes {dimension_semantics = [#tpu.dimension_semantics<parallel>], iteration_bounds = array<i64: 1>, scalar_prefetch = 0 : i64, scratch_operands = 0 : i64, tpu.core_type = #tpu.core_type<tc>, window_params = [{transform_indices = @transform_0, window_bounds = array<i64: 16, 48>}, {pipeline_mode = #tpu.pipeline_mode<synchronous>, transform_indices = @transform_1, window_bounds = array<i64: 48, 32>}, {pipeline_mode = #tpu.pipeline_mode<synchronous>, transform_indices = @transform_2, window_bounds = array<i64: 1, 32>}, {transform_indices = @transform_3, window_bounds = array<i64: 16, 32>}]} {
    %c0 = arith.constant 0 : index
    %c0_0 = arith.constant 0 : index
    %0 = vector.load %arg1[%c0, %c0_0] : memref<16x48xf32, #tpu.memory_space<vmem>>, vector<16x48xf32>
    %c0_1 = arith.constant 0 : index
    %c0_2 = arith.constant 0 : index
    %1 = vector.load %arg2[%c0_1, %c0_2] : memref<48x32xf32, #tpu.memory_space<vmem>>, vector<48x32xf32>
    %cst = arith.constant dense<0.000000e+00> : vector<16x32xf32>
    %2 = tpu.matmul %0, %1, %cst {dimension_numbers = #tpu.dot_dimension_numbers<[1], [0], [0], [1], [0, 0, 1, 1], [], []>} : vector<16x48xf32>, vector<48x32xf32>, vector<16x32xf32> -> vector<16x32xf32>
    %c0_3 = arith.constant 0 : index
    %c0_4 = arith.constant 0 : index
    %3 = vector.load %arg3[%c0_3, %c0_4] : memref<1x32xf32, #tpu.memory_space<vmem>>, vector<1x32xf32>
    %4 = vector.broadcast %3 : vector<1x32xf32> to vector<16x32xf32>
    %5 = arith.addf %2, %4 : vector<16x32xf32>
    %c0_5 = arith.constant 0 : index
    %c0_6 = arith.constant 0 : index
    %6 = vector.load %arg4[%c0_5, %c0_6] : memref<16x32xf32, #tpu.memory_space<vmem>>, vector<16x32xf32>
    tpu.vector_store %arg4[%c0_5, %c0_6], %5 {strides = array<i32>} : memref<16x32xf32, #tpu.memory_space<vmem>>, vector<16x32xf32>,
    return
  }
  func.func @transform_0(%arg0: i32) -> (i32, i32) {
    %c0_i32 = arith.constant 0 : i32
    %c0_i32_0 = arith.constant 0 : i32
    return %arg0, %c0_i32 : i32, i32
  }
  func.func @transform_1(%arg0: i32) -> (i32, i32) {
    %c0_i32 = arith.constant 0 : i32
    %c0_i32_0 = arith.constant 0 : i32
    %c0_i32_1 = arith.constant 0 : i32
    return %c0_i32, %c0_i32_0 : i32, i32
  }
  func.func @transform_2(%arg0: i32) -> (i32, i32) {
    %c0_i32 = arith.constant 0 : i32
    %c0_i32_0 = arith.constant 0 : i32
    %c0_i32_1 = arith.constant 0 : i32
    return %c0_i32, %c0_i32_0 : i32, i32
  }
  func.func @transform_3(%arg0: i32) -> (i32, i32) {
    %c0_i32 = arith.constant 0 : i32
    %c0_i32_0 = arith.constant 0 : i32
    return %arg0, %c0_i32 : i32, i32
  }
}

</mosaic_0001>

<bundles_post_ra>
// kernel: tpu_custom_call.1
= control target key start
LH: loop header
LB: loop body
LE: loop exit
PB: predicated region body
PF: predicated region fallthrough
CT: control target
= control target key end

     0   :  { %vm30_vm0 = vcmask 392192   ;;  %s260_s0 = inlined_call_operand.vmem [shape: f32[16,48], index: 0, kind: input, shape index: {}]   ;;  %s261_s1 = inlined_call_operand.vmem [shape: f32[48,32], index: 1, kind: input, shape index: {}]   ;;  %s262_s2 = inlined_call_operand.vmem [shape: f32[1,32], index: 2, kind: input, shape index: {}]   ;;  %s263_s3 = inlined_call_operand.hbm [shape: f32[16,32], index: 3, kind: output, shape index: {}]  }
   0x1   :  { %v17_v0 = vld [vmem:[%s261_s1] sm:$0xff]  ;;  %v18_v1 = vld [vmem:[%s261_s1 + $0x8] sm:$0xff]  ;;  %v19_v2 = vld [vmem:[%s261_s1 + $0x10] sm:$0xff] }
   0x2   :  { %v157_v3 = vpack.c.bf16 %v18_v1, %v17_v0  ;;  %v20_v4 = vld [vmem:[%s261_s1 + $0x18] sm:$0xff]  ;;  %v21_v5 = vld [vmem:[%s261_s1 + $0x20] sm:$0xff]  ;;  %v22_v7 = vld [vmem:[%s261_s1 + $0x28] sm:$0xff] }
   0x3   :  { %v161_v6 = vpack.c.bf16 %v20_v4, %v19_v2  ;;  %v15_v8 = vld [vmem:[%s260_s0] sm:$0xff] }
   0x4   :  { %8 = vsyncpa [#allocation3], 0  ;;  %158 = vmatprep.subr.bf16.mxu0 %v157_v3  ;;  %154 = vmatprep.mubr.msk.f32.mxu0 %vm30_vm0, %v15_v8  ;;  %v165_v9 = vpack.c.bf16 %v22_v7, %v21_v5  ;;  %v16_v10 = vld [vmem:[%s260_s0 + $0x8] sm:$0xff]  ;;  %v131_v11 = vld [vmem:[%s262_s2] ss:$0 sm:$0xff]  ;;  %s196_s29 = smov [#allocation2]  }
   0x5   :  { %160 = vmatpush3.bf16.msra.mxu0 %v157_v3  ;;  %s120_s30 = sshll.u32 %s196_s29, 4  ;;  %vm112_vm1 = vcmask 261120   ;;  %s121_s30 = int_to_ptr.vmem [resolvable:$true] %s120_s30 }
   0x6   :  { %162 = vmatprep.subr.bf16.mxu0 %v161_v6  ;;  %s172_s4 = scalar_lea.vmem %s121_s30, 256  ;;  %p177_p1 = scmp.lt.s32.totalorder %s121_s30, %s121_s30 }
   0x7   :  { %p173_p0 = scmp.ne.s32.totalorder %s121_s30, %s172_s4  ;;  %p178_p2 = scmp.lt.s32.totalorder %s172_s4, %s172_s4 }
   0x9   :  { %164 = vmatpush3.bf16.msra.mxu0 %v161_v6  ;;  %p179_p3 = por %p178_p2, %p177_p1 }
   0xa   :  { %166 = vmatprep.subr.bf16.mxu0 %v165_v9 }
   0xb   :  { %p180_p4 = pnand %p179_p3, %p173_p0 }
   0xd   :  { %168 = vmatpush3.bf16.msra.mxu0 %v165_v9 }
  0x10   :  { %155 = vmatmul.mubr.msk.f32.vlgmr.msra.gmra.mrb[0].mxu0 %vm30_vm0, %v16_v10 }
  0xe3   :  { %v156_v12 = vpop.f32.mrb[0].mxu0 }
  0xe4   :  { %v109_v13 = vadd.f32 %v156_v12, %v131_v11  ;;  %v103_v14 = vpop.f32.mrb[1].mxu0 }
  0xe5   :  { %v104_v15 = vadd.f32 %v131_v11, %v103_v14 }
  0xe6   :  { %114 = vst.msk [vmem:[#allocation2 + $0x8] sm:$0xff] %vm112_vm1, %v109_v13 }
  0xe7   :  { %113 = vst.msk [vmem:[#allocation2] sm:$0xff] %vm112_vm1, %v104_v15 }
  0xe8   :  { %183 = shalt.err (!%p180_p4)
}
  0xe9   :  { %s184_s2 = scalar_lea.hbm %s263_s3, 256 }
  0xea   :  { %p185_p5 = scmp.ne.s32.totalorder %s263_s3, %s184_s2  ;;  %p188_p6 = scmp.lt.u32.totalorder %s184_s2, %s263_s3 }
  0xec   :  { %p190_p7 = pnand %p188_p6, %p185_p5 }
  0xee   :  { %193 = shalt.err (!%p190_p7)
}
  0xef   :  { %s197_s10 = smov 128   ;;  %s198_s11 = smov 8  }
  0xf0   :  { %126 = dma.vmem_to_hbm [thread:$0]  %s121_s30, 256, %s263_s3, [#allocation3], %s197_s10, %s197_s10, %s198_s11  }
  0xf1   :  { %194 = dma.done.wait [#allocation3], 256  }
  0xf2   :  { %195 = vsyncadd [#allocation3], 4294967040 }
  0xf3   :  { %130 = vsyncpa [#allocation3], 1 }

</bundles_post_ra>
